<compile_context>
chip_gen: v5e
topology: v5e:2x2
jax: 0.10.0
libtpu: 0.0.40
codegen_flags: <defaults>
</compile_context>

<pallas_src>
import functools
import math

import jax
import jax.numpy as jnp
import numpy as np
from jax.experimental import pallas as pl
from jax.experimental.pallas import tpu as pltpu


def attention_kernel(e_ref, w2_ref, v_ref, o_ref, *, approx_recip):
    """One padded batch block per grid step.

    e_ref : (T, Bt, H)  encoder outputs, native seq-first layout (no transpose)
    w2_ref: (H, H)      weight acting on the encoder half of cat[h, e]
                        (hidden half + bias cancel under the softmax over T)
    v_ref : (1, H)      attention vector v
    o_ref : (T, Bt)     relu(score) in natural (T, batch) layout
    """
    T, Bt, H = e_ref.shape

    # One MXU push: (T*Bt, H) @ (H, H) with f32 accumulation.  Bt is padded to
    # the sublane-packing granularity in the wrapper, so the leading-dim merge
    # is tile-aligned (no relayout).
    e_flat = e_ref[...].reshape(T * Bt, H)
    energy = jnp.dot(e_flat, w2_ref[...],
                     preferred_element_type=jnp.float32).reshape(T, Bt, H)

    # Softmax over T (axis 0) with the 1/Z normalization fused into the
    # v-scale, so the full-size (T, Bt, H) tensor is never divided.
    m = jnp.max(energy, axis=0, keepdims=True)               # (1, Bt, H)
    p = jnp.exp(energy - m)                                  # (T, Bt, H)
    z = jnp.sum(p, axis=0, keepdims=True)                    # (1, Bt, H)
    inv_z = pl.reciprocal(z, approx=approx_recip)            # EUP slot if approx
    vz = v_ref[...] * inv_z                                  # (1, Bt, H)

    score = jnp.sum(p * vz, axis=-1)                         # (T, Bt)
    o_ref[...] = jnp.maximum(score, 0.0).astype(o_ref.dtype)


def mctn_attention(hidden, encoder_outputs, W, b, v, *, block_b=None,
                   mxu_dtype=None):
    """hidden (B, H), encoder_outputs (T, B, H); W (H, 2H), b (H,), v (H,).

    block_b  : padded batch elements per grid step (default: sized from the
               chip's VMEM capacity; must be a multiple of the sublane packing
               granularity of the operand dtype: 8 for f32, 16 for bf16).
    mxu_dtype: optional dtype (e.g. jnp.bfloat16 -- valid on v5e/v6e/v7x) for
               the encoder/weight MXU operands; softmax / score / accumulation
               stay float32.

    The PyTorch layer's hidden@W1 + bias contribution is constant over the
    softmax (time) axis and cancels exactly, so `hidden` and `b` are accepted
    for API parity but never read.
    """
    T, B, H = encoder_outputs.shape
    del hidden, b   # cancels under the softmax over T (shift invariance per (b, h))

    in_dtype = jnp.dtype(mxu_dtype) if mxu_dtype is not None \
        else jnp.dtype(encoder_outputs.dtype)
    in_bytes = in_dtype.itemsize
    g = 8 * max(1, 4 // in_bytes)          # sublane packing: 8 f32, 16 bf16

    # ---- VMEM-capacity-driven block-size heuristic -----------------------
    def step_bytes(bb):
        enc = 2 * T * bb * H * in_bytes    # encoder block (double-buffered)
        tmp = 2 * T * bb * H * 4           # f32 energy + exp temporaries
        out = 2 * T * bb * 4               # output block (double-buffered)
        return enc + tmp + out

    weight_bytes = 2 * H * H * in_bytes + 2 * H * 4   # W2 + v (double-buffered)
    try:
        vmem_cap = int(pltpu.get_tpu_info().vmem_capacity_bytes)
    except Exception:                      # be conservative: v7x per-core VMEM
        vmem_cap = 64 * 2**20
    budget = (vmem_cap * 6) // 10 - weight_bytes      # leave compiler headroom

    B_min = -(-B // g) * g                 # batch padded to the packing granule
    if block_b is None:
        cands = [bb for bb in range(g, B_min + 1, g) if step_bytes(bb) <= budget]
        if not cands:
            # TODO(synk): for very large T*H even block_b=g overflows VMEM; a
            # second "arbitrary" grid axis over H chunks (softmax over T is
            # per-(b,h), so exact) with a score accumulator would be needed.
            block_b = g
        else:
            block_b = cands[-1]            # largest block that fits
            if B_min >= 2 * g:
                # Prefer >=2 grid steps (megacore / both v7x TensorCores) while
                # still feeding the MXU >=256 rows per push (v6e 2x256^2 MXU).
                multi = [bb for bb in cands if -(-B_min // bb) >= 2]
                good = [bb for bb in multi if T * bb >= 256]
                if good:
                    block_b = good[-1]
                elif multi:
                    block_b = multi[-1]
    elif block_b % g != 0:
        raise ValueError(f"block_b must be a multiple of {g} for "
                         f"{in_dtype.name} operands")

    B_pad = -(-B // block_b) * block_b
    nb = B_pad // block_b

    # Split the concat linear: cat[h, e] @ W.T == h @ W[:, :H].T + e @ W[:, H:].T
    # Only the encoder half survives the softmax.
    w2 = W[:, H:].T                                        # (H, H)
    vv = v.reshape(1, H).astype(jnp.float32)

    enc = encoder_outputs                                  # native (T, B, H)
    if mxu_dtype is not None:
        enc = enc.astype(mxu_dtype)
        w2 = w2.astype(mxu_dtype)
    if B_pad != B:
        enc = jnp.pad(enc, ((0, 0), (0, B_pad - B), (0, 0)))

    est = step_bytes(block_b) + weight_bytes
    vmem_limit = int(min(max(est * 3 // 2, 32 * 2**20), (vmem_cap * 9) // 10))

    kernel = functools.partial(attention_kernel,
                               approx_recip=(mxu_dtype is not None))

    out_tb = pl.pallas_call(
        kernel,
        out_shape=jax.ShapeDtypeStruct((T, B_pad), jnp.float32),
        grid_spec=pltpu.PrefetchScalarGridSpec(
            num_scalar_prefetch=0,
            grid=(nb,),
            in_specs=[
                pl.BlockSpec((T, block_b, H), lambda i: (0, i, 0)),  # encoder
                pl.BlockSpec((H, H), lambda i: (0, 0)),              # W2 (resident)
                pl.BlockSpec((1, H), lambda i: (0, 0)),              # v  (resident)
            ],
            out_specs=pl.BlockSpec((T, block_b), lambda i: (0, i)),
        ),
        compiler_params=pltpu.CompilerParams(
            dimension_semantics=("parallel",),   # batch blocks are independent
            vmem_limit_bytes=vmem_limit,
        ),
    )(enc, w2, vv)

    # (T, B_pad) -> (B, 1, T): drop the padded rows; the tiny transpose is a
    # wrapper-side XLA op (the kernel store stays in its natural layout).
    return out_tb[:, :B].T[:, None, :]


def reference_attention(hidden, encoder_outputs, W, b, v):
    """Pure-JAX transcription of the PyTorch forward (full math, incl. hidden)."""
    T, B, H = encoder_outputs.shape
    h = jnp.broadcast_to(hidden[None], (T, B, H)).transpose(1, 0, 2)  # (B,T,H)
    e = encoder_outputs.transpose(1, 0, 2)                            # (B,T,H)
    x = jnp.concatenate([h, e], axis=2)                               # (B,T,2H)
    energy = x @ W.T + b                                              # (B,T,H)
    energy = jax.nn.softmax(energy, axis=1)                           # over T
    score = jnp.einsum("h,bth->bt", v, energy)                        # (B,T)
    return jax.nn.relu(score)[:, None, :]                             # (B,1,T)


if __name__ == "__main__":
    B, T, H = 2, 8, 32

    key = jax.random.PRNGKey(0)
    k_hid, k_enc, k_w, k_b, k_v = jax.random.split(key, 5)

    # Deterministic parameter init mimicking the PyTorch module's __init__.
    lin_bound = 1.0 / math.sqrt(2 * H)
    W = jax.random.uniform(k_w, (H, 2 * H), jnp.float32, -lin_bound, lin_bound)
    b = jax.random.uniform(k_b, (H,), jnp.float32, -lin_bound, lin_bound)
    v_bound = 1.0 / math.sqrt(H)
    v = jax.random.uniform(k_v, (H,), jnp.float32, -v_bound, v_bound)

    hidden = jax.random.normal(k_hid, (B, H), jnp.float32)
    encoder_outputs = jax.random.normal(k_enc, (T, B, H), jnp.float32)

    # f32 path (exact reciprocal): must match the full reference, including the
    # hidden@W1 + bias term the kernel drops via softmax shift invariance.
    out = jax.block_until_ready(mctn_attention(hidden, encoder_outputs, W, b, v))
    ref = reference_attention(hidden, encoder_outputs, W, b, v)
    assert out.shape == (B, 1, T), out.shape
    np.testing.assert_allclose(np.asarray(out), np.asarray(ref),
                               rtol=1e-5, atol=1e-5)

    # bf16 MXU-operand path (valid on v5e/v6e/v7x): compare against a reference
    # on bf16-rounded inputs; both sides accumulate in f32.
    out_bf16 = jax.block_until_ready(
        mctn_attention(hidden, encoder_outputs, W, b, v,
                       mxu_dtype=jnp.bfloat16))
    rd = lambda x: x.astype(jnp.bfloat16).astype(jnp.float32)
    ref_bf16 = reference_attention(rd(hidden), rd(encoder_outputs), rd(W), b, v)
    np.testing.assert_allclose(np.asarray(out_bf16), np.asarray(ref_bf16),
                               rtol=2e-2, atol=2e-2)

    print("KERNEL_OK")
</pallas_src>

<mosaic_0001>
module attributes {stable_mosaic.version = 11 : i64} {
  func.func @attention_kernel(%arg0: i32, %arg1: memref<8x8x32xf32, #tpu.memory_space<vmem>>, %arg2: memref<32x32xf32, #tpu.memory_space<vmem>>, %arg3: memref<1x32xf32, #tpu.memory_space<vmem>>, %arg4: memref<8x8xf32, #tpu.memory_space<vmem>>) attributes {dimension_semantics = [#tpu.dimension_semantics<parallel>], iteration_bounds = array<i64: 1>, scalar_prefetch = 0 : i64, scratch_operands = 0 : i64, tpu.core_type = #tpu.core_type<tc>, window_params = [{transform_indices = @transform_0, window_bounds = array<i64: 8, 8, 32>}, {pipeline_mode = #tpu.pipeline_mode<synchronous>, transform_indices = @transform_1, window_bounds = array<i64: 32, 32>}, {pipeline_mode = #tpu.pipeline_mode<synchronous>, transform_indices = @transform_2, window_bounds = array<i64: 1, 32>}, {transform_indices = @transform_3, window_bounds = array<i64: 8, 8>}]} {
    %c0 = arith.constant 0 : index
    %c0_0 = arith.constant 0 : index
    %c0_1 = arith.constant 0 : index
    %0 = vector.load %arg1[%c0, %c0_0, %c0_1] : memref<8x8x32xf32, #tpu.memory_space<vmem>>, vector<8x8x32xf32>
    %1 = vector.shape_cast %0 : vector<8x8x32xf32> to vector<64x32xf32>
    %c0_2 = arith.constant 0 : index
    %c0_3 = arith.constant 0 : index
    %2 = vector.load %arg2[%c0_2, %c0_3] : memref<32x32xf32, #tpu.memory_space<vmem>>, vector<32x32xf32>
    %cst = arith.constant dense<0.000000e+00> : vector<64x32xf32>
    %3 = tpu.matmul %1, %2, %cst {dimension_numbers = #tpu.dot_dimension_numbers<[1], [0], [0], [1], [0, 0, 1, 1], [], []>} : vector<64x32xf32>, vector<32x32xf32>, vector<64x32xf32> -> vector<64x32xf32>
    %4 = vector.shape_cast %3 : vector<64x32xf32> to vector<8x8x32xf32>
    %cst_4 = arith.constant dense<0xFF800000> : vector<8x32xf32>
    %5 = vector.multi_reduction <maximumf>, %4, %cst_4 [0] : vector<8x8x32xf32> to vector<8x32xf32>
    %6 = vector.shape_cast %5 : vector<8x32xf32> to vector<1x8x32xf32>
    %7 = vector.broadcast %6 : vector<1x8x32xf32> to vector<8x8x32xf32>
    %8 = arith.subf %4, %7 : vector<8x8x32xf32>
    %9 = math.exp %8 : vector<8x8x32xf32>
    %cst_5 = arith.constant dense<0.000000e+00> : vector<8x32xf32>
    %10 = vector.multi_reduction <add>, %9, %cst_5 [0] : vector<8x8x32xf32> to vector<8x32xf32>
    %11 = vector.shape_cast %10 : vector<8x32xf32> to vector<1x8x32xf32>
    %12 = tpu.reciprocal %11 : vector<1x8x32xf32> -> vector<1x8x32xf32>
    %c0_6 = arith.constant 0 : index
    %c0_7 = arith.constant 0 : index
    %13 = vector.load %arg3[%c0_6, %c0_7] : memref<1x32xf32, #tpu.memory_space<vmem>>, vector<1x32xf32>
    %14 = vector.shape_cast %13 : vector<1x32xf32> to vector<1x1x32xf32>
    %15 = vector.broadcast %14 : vector<1x1x32xf32> to vector<1x8x32xf32>
    %16 = arith.mulf %15, %12 : vector<1x8x32xf32>
    %17 = vector.broadcast %16 : vector<1x8x32xf32> to vector<8x8x32xf32>
    %18 = arith.mulf %9, %17 : vector<8x8x32xf32>
    %cst_8 = arith.constant dense<0.000000e+00> : vector<8x8xf32>
    %19 = vector.multi_reduction <add>, %18, %cst_8 [2] : vector<8x8x32xf32> to vector<8x8xf32>
    %cst_9 = arith.constant 0.000000e+00 : f32
    %20 = vector.broadcast %cst_9 : f32 to vector<8x8xf32>
    %21 = arith.maximumf %19, %20 : vector<8x8xf32>
    %c0_10 = arith.constant 0 : index
    %c0_11 = arith.constant 0 : index
    %22 = vector.load %arg4[%c0_10, %c0_11] : memref<8x8xf32, #tpu.memory_space<vmem>>, vector<8x8xf32>
    tpu.vector_store %arg4[%c0_10, %c0_11], %21 {strides = array<i32>} : memref<8x8xf32, #tpu.memory_space<vmem>>, vector<8x8xf32>,
    return
  }
  func.func @transform_0(%arg0: i32) -> (i32, i32, i32) {
    %c0_i32 = arith.constant 0 : i32
    %c0_i32_0 = arith.constant 0 : i32
    %c0_i32_1 = arith.constant 0 : i32
    return %c0_i32, %arg0, %c0_i32_0 : i32, i32, i32
  }
  func.func @transform_1(%arg0: i32) -> (i32, i32) {
    %c0_i32 = arith.constant 0 : i32
    %c0_i32_0 = arith.constant 0 : i32
    %c0_i32_1 = arith.constant 0 : i32
    return %c0_i32, %c0_i32_0 : i32, i32
  }
  func.func @transform_2(%arg0: i32) -> (i32, i32) {
    %c0_i32 = arith.constant 0 : i32
    %c0_i32_0 = arith.constant 0 : i32
    %c0_i32_1 = arith.constant 0 : i32
    return %c0_i32, %c0_i32_0 : i32, i32
  }
  func.func @transform_3(%arg0: i32) -> (i32, i32) {
    %c0_i32 = arith.constant 0 : i32
    %c0_i32_0 = arith.constant 0 : i32
    return %c0_i32, %arg0 : i32, i32
  }
}

</mosaic_0001>

<bundles_post_ra>
// kernel: tpu_custom_call.1
= control target key start
LH: loop header
LB: loop body
LE: loop exit
PB: predicated region body
PF: predicated region fallthrough
CT: control target
= control target key end

     0   :  { %8 = vsyncpa [#allocation3], 0  ;;  %s482_s0 = inlined_call_operand.hbm [shape: f32[8,8,32], index: 0, kind: input, shape index: {}]   ;;  %s483_s1 = inlined_call_operand.hbm [shape: f32[32,32], index: 1, kind: input, shape index: {}]   ;;  %s484_s2 = inlined_call_operand.vmem [shape: f32[1,32], index: 2, kind: input, shape index: {}]   ;;  %s485_s3 = inlined_call_operand.hbm [shape: f32[8,8], index: 3, kind: output, shape index: {}]  }
   0x1   :  { %9 = vsyncpa [#allocation6], 0 }
   0x2   :  { %10 = vsyncpa [#allocation4], 0  ;;  %s15_s14 = sshll.u32 %s482_s0, 4  ;;  %s413_s15 = smov [#allocation2]   ;;  %s16_s14 = int_to_ptr.hbm [resolvable:$true] %s15_s14 }
   0x3   :  { %s17_s16 = sshll.u32 %s413_s15, 4  ;;  %s28_s19 = sshll.u32 %s483_s1, 4  ;;  %s18_s16 = int_to_ptr.vmem [resolvable:$true] %s17_s16  ;;  %s29_s19 = int_to_ptr.hbm [resolvable:$true] %s28_s19 }
   0x4   :  { %s414_s20 = smov 128   ;;  %s415_s21 = smov 8  }
   0x5   :  { %23 = dma.hbm_to_vmem [thread:$0]  %s16_s14, 1024, %s18_s16, [#allocation3], %s414_s20, %s414_s20, %s415_s21  }
   0x6   :  { %s416_s22 = smov [#allocation5]  }
   0x7   :  { %s30_s23 = sshll.u32 %s416_s22, 4  ;;  %s31_s23 = int_to_ptr.vmem [resolvable:$true] %s30_s23 }
   0x8   :  { %36 = dma.hbm_to_vmem [thread:$0]  %s29_s19, 512, %s31_s23, [#allocation6], %s414_s20, %s414_s20, %s415_s21  }
   0x9   :  { %407 = dma.done.wait [#allocation3], 1024  }
   0xa   :  { %408 = vsyncadd [#allocation3], 4294966272 }
   0xb   :  { %409 = dma.done.wait [#allocation6], 512  }
   0xc   :  { %410 = vsyncadd [#allocation6], 4294966784  ;;  %v58_v0 = vld [vmem:[#allocation5 + $0x18] sm:$0xff]  ;;  %v57_v1 = vld [vmem:[#allocation5 + $0x10] sm:$0xff]  ;;  %vm59_vm0 = vcmask 261120   ;;  %vm256_vm5 = vcmask 1041409  }
   0xd   :  { %300 = vmatpush.msra.mxu2 %v58_v0  ;;  %301 = vmatpush.msra.mxu3 %v58_v0  ;;  %v56_v2 = vld [vmem:[#allocation5 + $0x8] sm:$0xff]  ;;  %v55_v3 = vld [vmem:[#allocation5] sm:$0xff]  ;;  %v53_v5 = vld [vmem:[#allocation2 + $0x30] sm:$0xff]  ;;  %vm258_vm6 = vcmask 1042434   ;;  %vm260_vm7 = vcmask 1043459   ;;  %vm262_vm8 = vcmask 1044484  }
   0xe   :  { %96 = vmatpush.msra.mxu0 %v58_v0  ;;  %299 = vmatpush.msra.mxu1 %v58_v0  ;;  %v51_v4 = vld [vmem:[#allocation2 + $0x20] sm:$0xff]  ;;  %v49_v7 = vld [vmem:[#allocation2 + $0x10] sm:$0xff]  ;;  %v52_v8 = vld [vmem:[#allocation2 + $0x28] sm:$0xff]  ;;  %vm264_vm9 = vcmask 1045509   ;;  %vm266_vm10 = vcmask 1046534   ;;  %s280_s27 = sshll.u32 %s485_s3, 4  ;;  %s281_s27 = int_to_ptr.hbm [resolvable:$true] %s280_s27 }
   0xf   :  { %303 = vmatpush.msra.mxu2 %v57_v1  ;;  %304 = vmatpush.msra.mxu3 %v57_v1  ;;  %v47_v6 = vld [vmem:[#allocation2] sm:$0xff]  ;;  %v54_v9 = vld [vmem:[#allocation2 + $0x38] sm:$0xff]  ;;  %v48_v10 = vld [vmem:[#allocation2 + $0x8] sm:$0xff]  ;;  %vm268_vm11 = vcmask 1047559   ;;  %vm271_vm12 = vcmask 64512  }
  0x10   :  { %97 = vmatpush.msra.mxu0 %v57_v1  ;;  %302 = vmatpush.msra.mxu1 %v57_v1  ;;  %v50_v11 = vld [vmem:[#allocation2 + $0x18] sm:$0xff] }
  0x11   :  { %306 = vmatpush.msra.mxu2 %v56_v2  ;;  %307 = vmatpush.msra.mxu3 %v56_v2 }
  0x12   :  { %98 = vmatpush.msra.mxu0 %v56_v2  ;;  %305 = vmatpush.msra.mxu1 %v56_v2 }
  0x13   :  { %309 = vmatpush.msra.mxu2 %v55_v3  ;;  %310 = vmatpush.msra.mxu3 %v55_v3 }
  0x14   :  { %295 = vmatmul.msk.f32.vlgmr.msra.gmra.mxu2 %vm59_vm0, %v51_v4  ;;  %297 = vmatmul.msk.f32.vlgmr.msra.gmra.mxu3 %vm59_vm0, %v53_v5 }
  0x15   :  { %99 = vmatpush.msra.mxu0 %v55_v3  ;;  %308 = vmatpush.msra.mxu1 %v55_v3 }
  0x16   :  { %291 = vmatmul.msk.f32.vlgmr.msra.gmra.mxu0 %vm59_vm0, %v47_v6  ;;  %293 = vmatmul.msk.f32.vlgmr.msra.gmra.mxu1 %vm59_vm0, %v49_v7 }
  0x1c   :  { %296 = vmatmul.msk.f32.gmra.mxu2 %vm59_vm0, %v52_v8  ;;  %298 = vmatmul.msk.f32.gmra.mxu3 %vm59_vm0, %v54_v9 }
  0x1e   :  { %292 = vmatmul.msk.f32.gmra.mxu0 %vm59_vm0, %v48_v10  ;;  %294 = vmatmul.msk.f32.gmra.mxu1 %vm59_vm0, %v50_v11 }
  0x93   :  { %v101_v12 = vpop.f32.mrf.mxu0  ;;  %v107_v13 = vpop.f32.mrf.mxu1 }
  0x94   :  { %v125_v18 = vsel %vm59_vm0, %v101_v12, -inf  ;;  %v127_v19 = vsel %vm59_vm0, %v107_v13, -inf }
  0x97   :  { %v113_v14 = vpop.f32.mrf.mxu2  ;;  %v119_v15 = vpop.f32.mrf.mxu3 }
  0x98   :  { %v129_v20 = vsel %vm59_vm0, %v113_v14, -inf  ;;  %v133_v21 = vsel %vm59_vm0, %v119_v15, -inf }
  0x99   :  { %v130_v28 = vmax.f32 %v125_v18, %v129_v20  ;;  %v134_v29 = vmax.f32 %v127_v19, %v133_v21 }
  0x9b   :  { %v104_v16 = vpop.f32.mrf.mxu0  ;;  %v110_v17 = vpop.f32.mrf.mxu1 }
  0x9c   :  { %v126_v22 = vsel %vm59_vm0, %v104_v16, -inf  ;;  %v128_v23 = vsel %vm59_vm0, %v110_v17, -inf }
  0x9f   :  { %v116_v24 = vpop.f32.mrf.mxu2  ;;  %v122_v25 = vpop.f32.mrf.mxu3 }
  0xa0   :  { %v131_v26 = vsel %vm59_vm0, %v116_v24, -inf  ;;  %v135_v27 = vsel %vm59_vm0, %v122_v25, -inf }
  0xa1   :  { %v132_v30 = vmax.f32 %v126_v22, %v131_v26  ;;  %v136_v31 = vmax.f32 %v128_v23, %v135_v27 }
  0xa3   :  { %v137_v32 = vmax.f32 %v130_v28, %v132_v30  ;;  %v138_v33 = vmax.f32 %v134_v29, %v136_v31 }
  0xa5   :  { %v139_v34 = vmax.f32 %v137_v32, %v138_v33 }
  0xa7   :  { %v140_v35 = vsub.f32 %v101_v12, %v139_v34  ;;  %v141_v36 = vsub.f32 %v104_v16, %v139_v34  ;;  %v142_v37 = vsub.f32 %v107_v13, %v139_v34  ;;  %v143_v38 = vsub.f32 %v110_v17, %v139_v34  ;;  %v316_v17 = vld [vmem:[%s484_s2] ss:$0 sm:$0xff]  ;;  %s417_s2 = smov [#allocation7]  }
  0xa8   :  { %v144_v39 = vsub.f32 %v113_v14, %v139_v34  ;;  %v145_v43 = vsub.f32 %v116_v24, %v139_v34  ;;  %v146_v45 = vsub.f32 %v119_v15, %v139_v34  ;;  %v147_v47 = vsub.f32 %v122_v25, %v139_v34  ;;  %s278_s24 = sshll.u32 %s417_s2, 4  ;;  %s279_s24 = int_to_ptr.vmem [resolvable:$true] %s278_s24 }
  0xa9   :  { %v148_v40 = vmul.f32 1.442695, %v140_v35  ;;  %v150_v41 = vmul.f32 1.442695, %v141_v36  ;;  %v152_v42 = vmul.f32 1.442695, %v142_v37 }
  0xaa   :  { %v154_v44 = vmul.f32 1.442695, %v143_v38  ;;  %v156_v46 = vmul.f32 1.442695, %v144_v39  ;;  %v158_v48 = vmul.f32 1.442695, %v145_v43 }
  0xab   :  { %317 = vpow2.f32 %v148_v40  ;;  %v160_v49 = vmul.f32 1.442695, %v146_v45  ;;  %v162_v52 = vmul.f32 1.442695, %v147_v47 }
  0xac   :  { %319 = vpow2.f32 %v150_v41  ;;  %v246_v41 = vlaneseq }
  0xad   :  { %321 = vpow2.f32 %v152_v42 }
  0xae   :  { %323 = vpow2.f32 %v154_v44  ;;  %v247_v42 = vand.u32 127, %v246_v41 }
  0xaf   :  { %325 = vpow2.f32 %v156_v46 }
  0xb0   :  { %327 = vpow2.f32 %v158_v48 }
  0xb1   :  { %v318_v50 = vpop.eup %317  ;;  %329 = vpow2.f32 %v160_v49 }
  0xb2   :  { %v320_v51 = vpop.eup %319  ;;  %v164_v53 = vsel %vm59_vm0, %v318_v50, 0.0  ;;  %331 = vpow2.f32 %v162_v52 }
  0xb3   :  { %v322_v54 = vpop.eup %321  ;;  %v165_v55 = vsel %vm59_vm0, %v320_v51, 0.0 }
  0xb4   :  { %v324_v56 = vpop.eup %323  ;;  %v166_v57 = vadd.f32 %v165_v55, %v164_v53  ;;  %v167_v58 = vsel %vm59_vm0, %v322_v54, 0.0 }
  0xb5   :  { %v326_v59 = vpop.eup %325  ;;  %v169_v61 = vsel %vm59_vm0, %v324_v56, 0.0 }
  0xb6   :  { %v168_v60 = vadd.f32 %v167_v58, %v166_v57  ;;  %v328_v62 = vpop.eup %327  ;;  %v171_v0 = vsel %vm59_vm0, %v326_v59, 0.0 }
  0xb7   :  { %v330_v1 = vpop.eup %329  ;;  %v173_v3 = vsel %vm59_vm0, %v328_v62, 0.0 }
  0xb8   :  { %v170_v63 = vadd.f32 %v169_v61, %v168_v60  ;;  %v332_v4 = vpop.eup %331  ;;  %v175_v6 = vsel %vm59_vm0, %v330_v1, 0.0 }
  0xb9   :  { %v177_v8 = vsel %vm59_vm0, %v332_v4, 0.0 }
  0xba   :  { %v172_v2 = vadd.f32 %v171_v0, %v170_v63 }
  0xbc   :  { %v174_v5 = vadd.f32 %v173_v3, %v172_v2 }
  0xbe   :  { %v176_v7 = vadd.f32 %v175_v6, %v174_v5 }
  0xc0   :  { %v178_v9 = vadd.f32 %v177_v8, %v176_v7 }
  0xc2   :  { %333 = vrcp.f32 %v178_v9  ;;  %v190_v13 = vand.u32 2147483648, %v178_v9  ;;  %v188_v15 = vand.u32 2147483647, %v178_v9  ;;  %vm184_vm2 = vweird.f32 %v178_v9 }
  0xc4   :  { %v191_v18 = vor.u32 1.1754944e-38, %v190_v13  ;;  %vm189_vm4 = vcmp.eq.f32.partialorder %v188_v15, 8.507059e+37 }
  0xc8   :  { %v334_v10 = vpop.eup %333 }
  0xc9   :  { %v180_v11 = vmul.f32 %v334_v10, %v178_v9  ;;  %vm185_vm1 = vweird.f32 %v334_v10 }
  0xca   :  { %vm186_vm3 = vmor %vm184_vm2, %vm185_vm1 }
  0xcb   :  { %v181_v12 = vsub.f32 1.0, %v180_v11 }
  0xcd   :  { %v182_v14 = vmul.f32 %v334_v10, %v181_v12 }
  0xcf   :  { %v183_v16 = vadd.f32 %v334_v10, %v182_v14 }
  0xd1   :  { %v187_v19 = vsel %vm186_vm3, %v334_v10, %v183_v16 }
  0xd2   :  { %v192_v20 = vsel %vm189_vm4, %v191_v18, %v187_v19 }
  0xd3   :  { %v197_v21 = vmul.f32 %v316_v17, %v192_v20 }
  0xd5   :  { %v202_v22 = vmul.f32 %v326_v59, %v197_v21  ;;  %v200_v23 = vmul.f32 %v322_v54, %v197_v21  ;;  %v198_v24 = vmul.f32 %v318_v50, %v197_v21  ;;  %v203_v28 = vmul.f32 %v328_v62, %v197_v21 }
  0xd6   :  { %v201_v29 = vmul.f32 %v324_v56, %v197_v21  ;;  %v199_v30 = vmul.f32 %v320_v51, %v197_v21  ;;  %v205_v34 = vmul.f32 %v332_v4, %v197_v21  ;;  %v204_v35 = vmul.f32 %v330_v1, %v197_v21 }
  0xd7   :  { %v218_v25 = vsel %vm59_vm0, %v202_v22, 0.0  ;;  %v212_v26 = vsel %vm59_vm0, %v200_v23, 0.0  ;;  %v206_v27 = vsel %vm59_vm0, %v198_v24, 0.0  ;;  %v221_v31 = vsel %vm59_vm0, %v203_v28, 0.0 }
  0xd8   :  { %219 = vadd.xlane.f32.xlu2 %v218_v25  ;;  %213 = vadd.xlane.f32.xlu1 %v212_v26  ;;  %v215_v32 = vsel %vm59_vm0, %v201_v29, 0.0  ;;  %v209_v33 = vsel %vm59_vm0, %v199_v30, 0.0  ;;  %v227_v36 = vsel %vm59_vm0, %v205_v34, 0.0  ;;  %v224_v37 = vsel %vm59_vm0, %v204_v35, 0.0 }
  0xd9   :  { %207 = vadd.xlane.f32.xlu0 %v206_v27 }
  0xe0   :  { %222 = vadd.xlane.f32.xlu2 %v221_v31  ;;  %216 = vadd.xlane.f32.xlu1 %v215_v32 }
  0xe1   :  { %210 = vadd.xlane.f32.xlu0 %v209_v33 }
  0xe8   :  { %228 = vadd.xlane.f32.xlu1 %v227_v36 }
  0xe9   :  { %225 = vadd.xlane.f32.xlu0 %v224_v37 }
 0x14b   :  { %v214_v38 = vpop.xlane.xlu1 %213  ;;  %v220_v40 = vpop.xlane.xlu2 %219 }
 0x14c   :  { %v208_v39 = vpop.xlane.xlu0 %207  ;;  %v232_v45 = vmax.f32 %v214_v38, 0.0  ;;  %v234_v49 = vmax.f32 %v220_v40, 0.0 }
 0x14d   :  { %v230_v43 = vmax.f32 %v208_v39, 0.0 }
 0x14e   :  { %v250_v53 = vperm.slane %v232_v45, %v247_v42  ;;  %v252_v58 = vperm.slane %v234_v49, %v247_v42 }
 0x14f   :  { %v248_v50 = vperm.slane %v230_v43, %v247_v42 }
 0x153   :  { %v217_v44 = vpop.xlane.xlu1 %216  ;;  %v223_v51 = vpop.xlane.xlu2 %222 }
 0x154   :  { %v211_v46 = vpop.xlane.xlu0 %210  ;;  %v233_v47 = vmax.f32 %v217_v44, 0.0  ;;  %v235_v56 = vmax.f32 %v223_v51, 0.0 }
 0x155   :  { %v231_v48 = vmax.f32 %v211_v46, 0.0 }
 0x156   :  { %v251_v54 = vperm.slane %v233_v47, %v247_v42  ;;  %v253_v1 = vperm.slane %v235_v56, %v247_v42 }
 0x157   :  { %v249_v52 = vperm.slane %v231_v48, %v247_v42 }
 0x159   :  { %v257_v55 = vsel %vm256_vm5, %v249_v52, %v248_v50 }
 0x15a   :  { %v259_v57 = vsel %vm258_vm6, %v250_v53, %v257_v55 }
 0x15b   :  { %v261_v59 = vsel %vm260_vm7, %v251_v54, %v259_v57  ;;  %v229_v60 = vpop.xlane.xlu1 %228 }
 0x15c   :  { %v237_v61 = vmax.f32 %v229_v60, 0.0  ;;  %v226_v62 = vpop.xlane.xlu0 %225  ;;  %v263_v63 = vsel %vm262_vm8, %v252_v58, %v261_v59 }
 0x15d   :  { %v236_v0 = vmax.f32 %v226_v62, 0.0  ;;  %v265_v4 = vsel %vm264_vm9, %v253_v1, %v263_v63 }
 0x15e   :  { %v255_v2 = vperm.slane %v237_v61, %v247_v42 }
 0x15f   :  { %v254_v3 = vperm.slane %v236_v0, %v247_v42 }
 0x161   :  { %v267_v5 = vsel %vm266_vm10, %v254_v3, %v265_v4 }
 0x162   :  { %v269_v6 = vsel %vm268_vm11, %v255_v2, %v267_v5 }
 0x163   :  { %272 = vst.msk [vmem:[#allocation7] sm:$0xff] %vm271_vm12, %v269_v6 }
 0x164   :  { %283 = dma.vmem_to_hbm [thread:$0]  %s279_s24, 128, %s281_s27, [#allocation4]  }
 0x165   :  { %411 = dma.done.wait [#allocation4], 128  }
 0x166   :  { %412 = vsyncadd [#allocation4], 4294967168 }
 0x167   :  { %288 = vsyncpa [#allocation3], 1 }
 0x168   :  { %289 = vsyncpa [#allocation6], 1 }
 0x169   :  { %290 = vsyncpa [#allocation4], 1 }

</bundles_post_ra>
